<compile_context>
chip_gen: v7x
topology: tpu7x:2x2x1
jax: 0.10.0
libtpu: 0.0.40
codegen_flags: <defaults>
</compile_context>

<pallas_src>
import functools
import math

import jax
import jax.numpy as jnp
from jax.experimental import pallas as pl
from jax.experimental.pallas import tpu as pltpu

_NEG_BIG = -1e30                  # finite "-inf": exp(NEG - m) underflows to 0.
_VMEM_LIMIT = 48 * 1024 * 1024    # explicit scoped VMEM, headroom under v7x's 64 MiB.


def _round_up(x, m):
    return (x + m - 1) // m * m


def _pick_tile(t, desired, partial_align):
    """Pick a layout-friendly tile size and padded extent for a sequence dim."""
    t8 = _round_up(max(int(t), 1), 8)
    desired = _round_up(max(int(desired), partial_align), partial_align)
    if t8 <= desired:
        return t8, t8                      # single tile == full (padded) dim
    return desired, _round_up(int(t), desired)


# ----------------------------- projection kernel -----------------------------

def _proj_kernel(x_ref, w_ref, o_ref, *, scale):
    # One (batch, token-tile) step: y = (x @ W) * scale, f32 accumulation on MXU.
    y = jnp.dot(x_ref[0], w_ref[...], preferred_element_type=jnp.float32)
    if scale != 1.0:
        y = y * jnp.float32(scale)
    o_ref[0] = y.astype(o_ref.dtype)


def _project(x, w, *, scale, block_t):
    B, T, H = x.shape
    D = w.shape[1]
    return pl.pallas_call(
        functools.partial(_proj_kernel, scale=scale),
        out_shape=jax.ShapeDtypeStruct((B, T, D), x.dtype),
        grid_spec=pltpu.PrefetchScalarGridSpec(
            num_scalar_prefetch=0,
            grid=(B, T // block_t),
            in_specs=[
                pl.BlockSpec((1, block_t, H), lambda b, t: (b, t, 0)),
                pl.BlockSpec((H, D), lambda b, t: (0, 0)),
            ],
            out_specs=pl.BlockSpec((1, block_t, D), lambda b, t: (b, t, 0)),
        ),
        compiler_params=pltpu.CompilerParams(
            dimension_semantics=("parallel", "parallel"),
            vmem_limit_bytes=_VMEM_LIMIT,
        ),
    )(x, w)


# --------------------------- flash-attention kernel ---------------------------

def _flash_kernel(*refs, has_mask, block_kv, tv_valid, tv_padded):
    if has_mask:
        q_ref, k_ref, v_ref, mask_ref, o_ref, m_sc, l_sc, acc_sc = refs
    else:
        q_ref, k_ref, v_ref, o_ref, m_sc, l_sc, acc_sc = refs
        mask_ref = None

    kv = pl.program_id(2)

    @pl.when(kv == 0)
    def _init():
        m_sc[...] = jnp.full(m_sc.shape, _NEG_BIG, dtype=jnp.float32)
        l_sc[...] = jnp.zeros(l_sc.shape, dtype=jnp.float32)
        acc_sc[...] = jnp.zeros(acc_sc.shape, dtype=jnp.float32)

    q = q_ref[0]        # (bq, D) -- already scaled by 1/sqrt(D)
    k = k_ref[0]        # (bk, D)
    v = v_ref[0]        # (bk, D)

    # QK^T on the MXU, contracting the feature axis directly (no kp transpose).
    s = jax.lax.dot_general(
        q, k, dimension_numbers=(((1,), (1,)), ((), ())),
        preferred_element_type=jnp.float32)                    # (bq, bk) f32

    if has_mask:
        # NOTE: a fully-masked row yields a uniform average of V here, not the
        # NaN the reference produces (we use -1e30 instead of -inf).
        s = jnp.where(mask_ref[...] > 0, s, _NEG_BIG)
    elif tv_padded != tv_valid:
        # Only key padding to mask: generate it with an iota, no dense mask.
        col = kv * block_kv + jax.lax.broadcasted_iota(jnp.int32, s.shape, 1)
        s = jnp.where(col < tv_valid, s, _NEG_BIG)

    # Online softmax, all in f32.
    m_prev = m_sc[...]
    m_new = jnp.maximum(m_prev, jnp.max(s, axis=-1, keepdims=True))
    alpha = jnp.exp(m_prev - m_new)
    p = jnp.exp(s - m_new)
    l_sc[...] = alpha * l_sc[...] + jnp.sum(p, axis=-1, keepdims=True)
    acc_sc[...] = alpha * acc_sc[...] + jnp.dot(
        p.astype(v.dtype), v, preferred_element_type=jnp.float32)
    m_sc[...] = m_new

    @pl.when(kv == pl.num_programs(2) - 1)
    def _finalize():
        # EUP reciprocal (approx=True is available when ~1e-4 rel. err is OK).
        inv_l = pl.reciprocal(l_sc[...], approx=False)
        o_ref[0] = (acc_sc[...] * inv_l).astype(o_ref.dtype)


def _flash_attention(qp, kp, vp, mask_i8, *, block_q, block_kv, tv_valid, out_dtype):
    B, Tqp, D = qp.shape
    _, Tvp, _ = kp.shape
    has_mask = mask_i8 is not None

    in_specs = [
        pl.BlockSpec((1, block_q, D), lambda b, i, j: (b, i, 0)),    # qp
        pl.BlockSpec((1, block_kv, D), lambda b, i, j: (b, j, 0)),   # kp
        pl.BlockSpec((1, block_kv, D), lambda b, i, j: (b, j, 0)),   # vp
    ]
    args = [qp, kp, vp]
    if has_mask:
        in_specs.append(pl.BlockSpec((block_q, block_kv), lambda b, i, j: (i, j)))
        args.append(mask_i8)

    kernel = functools.partial(
        _flash_kernel, has_mask=has_mask, block_kv=block_kv,
        tv_valid=tv_valid, tv_padded=Tvp)

    return pl.pallas_call(
        kernel,
        out_shape=jax.ShapeDtypeStruct((B, Tqp, D), out_dtype),
        grid_spec=pltpu.PrefetchScalarGridSpec(
            num_scalar_prefetch=0,
            grid=(B, Tqp // block_q, Tvp // block_kv),
            in_specs=in_specs,
            out_specs=pl.BlockSpec((1, block_q, D), lambda b, i, j: (b, i, 0)),
            scratch_shapes=[
                pltpu.VMEM((block_q, 1), jnp.float32),   # running max  m
                pltpu.VMEM((block_q, 1), jnp.float32),   # running sum  l
                pltpu.VMEM((block_q, D), jnp.float32),   # running acc  (numerator)
            ],
        ),
        compiler_params=pltpu.CompilerParams(
            dimension_semantics=("parallel", "parallel", "arbitrary"),
            vmem_limit_bytes=_VMEM_LIMIT,
        ),
    )(*args)


# --------------------------------- wrapper ------------------------------------

def head_forward(q, k=None, v=None, *, wq, wk, wv, mask=None,
                 block_q=256, block_kv=256):
    """Pallas implementation of Head.forward.

    q: [B, T_Q, H]; k: [B, T_V, H] (defaults to q); v: [B, T_V, H] (defaults to k)
    wq/wk/wv: [H, D] (transposed vs. PyTorch's [D, H]); mask: [T_Q, T_V] or None
    (entries > 0 keep the score).  Returns [B, T_Q, D] in q's dtype.  Pass bf16
    inputs/weights for bf16 MXU throughput (accumulation & softmax stay f32).
    """
    if k is None:
        k = q
    if v is None:
        v = k

    B, Tq, H = q.shape
    _, Tv, _ = k.shape
    D = wq.shape[1]
    dtype = q.dtype

    k = k.astype(dtype)
    v = v.astype(dtype)
    wq = wq.astype(dtype)
    wk = wk.astype(dtype)
    wv = wv.astype(dtype)

    bq, Tq_pad = _pick_tile(Tq, block_q, partial_align=8)     # q tile: mult of 8
    bk, Tv_pad = _pick_tile(Tv, block_kv, partial_align=128)  # kv tile: mult of 128

    if Tq_pad != Tq:
        q = jnp.pad(q, ((0, 0), (0, Tq_pad - Tq), (0, 0)))
    if Tv_pad != Tv:
        k = jnp.pad(k, ((0, 0), (0, Tv_pad - Tv), (0, 0)))
        v = jnp.pad(v, ((0, 0), (0, Tv_pad - Tv), (0, 0)))

    # Projections run once per token; softmax scale folded into Q.
    qp = _project(q, wq, scale=1.0 / math.sqrt(D), block_t=bq)
    kp = _project(k, wk, scale=1.0, block_t=bk)
    vp = _project(v, wv, scale=1.0, block_t=bk)

    mask_i8 = None
    if mask is not None:
        mask_i8 = (jnp.asarray(mask) > 0).astype(jnp.int8)
        if (Tq_pad != Tq) or (Tv_pad != Tv):
            # Padded keys get mask == 0, so they never contribute.
            mask_i8 = jnp.pad(mask_i8, ((0, Tq_pad - Tq), (0, Tv_pad - Tv)))

    out = _flash_attention(qp, kp, vp, mask_i8,
                           block_q=bq, block_kv=bk,
                           tv_valid=Tv, out_dtype=dtype)
    if Tq_pad != Tq:
        out = out[:, :Tq, :]
    return out


# -------------------------------- reference -----------------------------------

def _reference(q, k, v, wq, wk, wv, mask=None):
    """Pure-JAX reference mirroring the PyTorch module."""
    qp = q @ wq
    kp = k @ wk
    vp = v @ wv
    scale = math.sqrt(kp.shape[2])
    att = jnp.einsum("bqd,bkd->bqk", qp, kp) / scale
    if mask is not None:
        att = jnp.where(mask[None, :, :] > 0, att, -jnp.inf)
    att = jax.nn.softmax(att, axis=2)
    return jnp.einsum("bqk,bkd->bqd", att, vp)


if __name__ == "__main__":
    key = jax.random.PRNGKey(0)

    # --- Small shapes implied by the module (single head). ---
    B, Tq, Tv, H, D = 2, 8, 8, 32, 16
    k_q, k_k, k_v, k_wq, k_wk, k_wv = jax.random.split(key, 6)
    q = jax.random.normal(k_q, (B, Tq, H), dtype=jnp.float32)
    kk = jax.random.normal(k_k, (B, Tv, H), dtype=jnp.float32)
    vv = jax.random.normal(k_v, (B, Tv, H), dtype=jnp.float32)

    bound = 1.0 / math.sqrt(H)   # nn.Linear-style uniform init, stored [H, D]
    wq = jax.random.uniform(k_wq, (H, D), jnp.float32, -bound, bound)
    wk = jax.random.uniform(k_wk, (H, D), jnp.float32, -bound, bound)
    wv = jax.random.uniform(k_wv, (H, D), jnp.float32, -bound, bound)

    mask = jnp.tril(jnp.ones((Tq, Tv), dtype=jnp.float32))

    # Self-attention (k=None, v=None) with causal mask.
    out = jax.block_until_ready(head_forward(q, wq=wq, wk=wk, wv=wv, mask=mask))
    ref = _reference(q, q, q, wq, wk, wv, mask)
    assert jnp.allclose(out, ref, atol=1e-5, rtol=1e-5), "small self-attn mismatch"

    # Cross-attention, no mask.
    out2 = jax.block_until_ready(head_forward(q, kk, vv, wq=wq, wk=wk, wv=wv))
    ref2 = _reference(q, kk, vv, wq, wk, wv, None)
    assert jnp.allclose(out2, ref2, atol=1e-5, rtol=1e-5), "small cross-attn mismatch"

    # --- Larger shapes exercising the multi-tile flash path + seq padding. ---
    B2, Tq2, Tv2, H2, D2 = 1, 320, 320, 64, 32
    k2 = jax.random.split(key, 5)
    q2 = jax.random.normal(k2[0], (B2, Tq2, H2), dtype=jnp.float32)
    bound2 = 1.0 / math.sqrt(H2)
    wq2 = jax.random.uniform(k2[1], (H2, D2), jnp.float32, -bound2, bound2)
    wk2 = jax.random.uniform(k2[2], (H2, D2), jnp.float32, -bound2, bound2)
    wv2 = jax.random.uniform(k2[3], (H2, D2), jnp.float32, -bound2, bound2)
    mask2 = jnp.tril(jnp.ones((Tq2, Tv2), dtype=jnp.float32))

    out3 = jax.block_until_ready(
        head_forward(q2, wq=wq2, wk=wk2, wv=wv2, mask=mask2,
                     block_q=256, block_kv=256))
    ref3 = _reference(q2, q2, q2, wq2, wk2, wv2, mask2)
    assert jnp.allclose(out3, ref3, atol=1e-4, rtol=1e-4), "tiled self-attn mismatch"

    # --- bf16 MXU-operand path (f32 accumulation & softmax); loose smoke check. ---
    out4 = jax.block_until_ready(
        head_forward(q.astype(jnp.bfloat16), wq=wq, wk=wk, wv=wv, mask=mask))
    assert jnp.allclose(out4.astype(jnp.float32), ref, atol=0.1, rtol=0.1), \
        "bf16 self-attn mismatch"

    print("KERNEL_OK")
</pallas_src>

<mosaic_0001>
module attributes {stable_mosaic.version = 11 : i64} {
  func.func @_proj_kernel(%arg0: i32, %arg1: i32, %arg2: memref<1x8x32xf32, #tpu.memory_space<vmem>>, %arg3: memref<32x16xf32, #tpu.memory_space<vmem>>, %arg4: memref<1x8x16xf32, #tpu.memory_space<vmem>>) attributes {dimension_semantics = [#tpu.dimension_semantics<parallel>, #tpu.dimension_semantics<parallel>], iteration_bounds = array<i64: 2, 1>, scalar_prefetch = 0 : i64, scratch_operands = 0 : i64, tpu.core_type = #tpu.core_type<tc>, window_params = [{transform_indices = @transform_0, window_bounds = array<i64: 1, 8, 32>}, {pipeline_mode = #tpu.pipeline_mode<synchronous>, transform_indices = @transform_1, window_bounds = array<i64: 32, 16>}, {transform_indices = @transform_2, window_bounds = array<i64: 1, 8, 16>}]} {
    %c0 = arith.constant 0 : index
    %c0_0 = arith.constant 0 : index
    %c0_1 = arith.constant 0 : index
    %0 = vector.load %arg2[%c0, %c0_0, %c0_1] : memref<1x8x32xf32, #tpu.memory_space<vmem>>, vector<1x8x32xf32>
    %1 = vector.shape_cast %0 : vector<1x8x32xf32> to vector<8x32xf32>
    %c0_2 = arith.constant 0 : index
    %c0_3 = arith.constant 0 : index
    %2 = vector.load %arg3[%c0_2, %c0_3] : memref<32x16xf32, #tpu.memory_space<vmem>>, vector<32x16xf32>
    %cst = arith.constant dense<0.000000e+00> : vector<8x16xf32>
    %3 = tpu.matmul %1, %2, %cst {dimension_numbers = #tpu.dot_dimension_numbers<[1], [0], [0], [1], [0, 0, 1, 1], [], []>} : vector<8x32xf32>, vector<32x16xf32>, vector<8x16xf32> -> vector<8x16xf32>
    %cst_4 = arith.constant 2.500000e-01 : f32
    %4 = vector.broadcast %cst_4 : f32 to vector<8x16xf32>
    %5 = arith.mulf %3, %4 : vector<8x16xf32>
    %c0_5 = arith.constant 0 : index
    %c0_6 = arith.constant 0 : index
    %c0_7 = arith.constant 0 : index
    %6 = vector.load %arg4[%c0_5, %c0_6, %c0_7] : memref<1x8x16xf32, #tpu.memory_space<vmem>>, vector<1x8x16xf32>
    %7 = vector.shape_cast %6 : vector<1x8x16xf32> to vector<8x16xf32>
    %8 = vector.shape_cast %5 : vector<8x16xf32> to vector<1x8x16xf32>
    tpu.vector_store %arg4[%c0_5, %c0_6, %c0_7], %8 {strides = array<i32>} : memref<1x8x16xf32, #tpu.memory_space<vmem>>, vector<1x8x16xf32>,
    return
  }
  func.func @transform_0(%arg0: i32, %arg1: i32) -> (i32, i32, i32) {
    %c0_i32 = arith.constant 0 : i32
    %c0_i32_0 = arith.constant 0 : i32
    return %arg0, %arg1, %c0_i32 : i32, i32, i32
  }
  func.func @transform_1(%arg0: i32, %arg1: i32) -> (i32, i32) {
    %c0_i32 = arith.constant 0 : i32
    %c0_i32_0 = arith.constant 0 : i32
    %c0_i32_1 = arith.constant 0 : i32
    return %c0_i32, %c0_i32_0 : i32, i32
  }
  func.func @transform_2(%arg0: i32, %arg1: i32) -> (i32, i32, i32) {
    %c0_i32 = arith.constant 0 : i32
    %c0_i32_0 = arith.constant 0 : i32
    return %arg0, %arg1, %c0_i32 : i32, i32, i32
  }
}

</mosaic_0001>

<bundles_post_ra>
// kernel: tpu_custom_call.1
= control target key start
LH: loop header
LB: loop body
LE: loop exit
PB: predicated region body
PF: predicated region fallthrough
CT: control target
= control target key end

     0   :  { %7 = vsyncpa [#allocation3], 0  ;;  %s647_s0 = inlined_call_operand.vmem [shape: f32[2,8,32], index: 0, kind: input, shape index: {}]   ;;  %s648_s1 = inlined_call_operand.vmem [shape: f32[32,16], index: 1, kind: input, shape index: {}]   ;;  %s649_s2 = inlined_call_operand.hbm [shape: f32[2,8,16], index: 2, kind: output, shape index: {}]  }
   0x1   :  { %9 = vsyncpa [#allocation3 + $0x1], 0  ;;  %s523_s9 = smov 0   ;;  %s525_s10 = smov 0  }
   0x2   :  { %s527_s11 = smov 0   ;;  %s529_s12 = smov 0  }
   0x3   :  { %s531_s13 = smov 0   ;;  %s533_s14 = smov 0  }
   0x4 LB: > { %s332_s15 = sadd.s32 4294967295, %s502_s14   ;;  %s333_s16 = sadd.s32 4294967294, %s502_s14   ;;  %s502_s14 = sphi %s533_s14, %s15_s14   ;;  %s498_s13 = sphi %s531_s13, %s656_s13   ;;  %s494_s12 = sphi %s529_s12, %s655_s12   ;;  %s490_s11 = sphi %s527_s11, %s654_s11   ;;  %s486_s10 = sphi %s525_s10, %s653_s10   ;;  %s482_s9 = sphi %s523_s9, %s652_s9  }
   0x5   : > { %s27_s17 = sadd.s32 1, %s498_s13  ;;  %s85_s18 = sadd.s32 1, %s490_s11 }
   0x6   : > { %p29_p0 = scmp.ge.s32.totalorder %s27_s17, 2  ;;  %p95_p1 = scmp.ne.s32.totalorder %s490_s11, %s486_s10 }
   0x7   : > { %p96_p2 = scmp.eq.s32.totalorder %s332_s15, 1  ;;  %p101_p3 = scmp.ne.s32.totalorder %s486_s10, %s482_s9 }
   0x8   : > { %s658_s17 = smov (%p29_p0, %s27_s17), 0  ;;  %p102_p5 = scmp.eq.s32.totalorder %s333_s16, 1 }
   0x9   : > { %p563_p4 = por %p96_p2, %p95_p1  ;;  %s80_s20 = ssub.s32 %s498_s13, %s658_s17 }
   0xa   : > { %p336_p6 = scmp.ge.s32.totalorder %s502_s14, 1  ;;  %p83_p7 = scmp.eq.s32.totalorder %s80_s20, 0 }
   0xb   : > { %p570_p8 = por %p102_p5, %p101_p3  ;;  %p133_p9 = scmp.lt.s32.totalorder %s502_s14, 3 }
   0xc   : > { %s576_s22 = scalar_select %p83_p7, %s490_s11, %s85_s18  }
   0xd   : > { %p134_p10 = pnand %p336_p6, %p133_p9 }
   0xe   : > { %v165_v0 = vld [vmem:[%s648_s1] sm:$0xff] (!%p134_p10)  ;;  %v166_v1 = vld [vmem:[%s648_s1 + $0x8] sm:$0xff] (!%p134_p10)  ;;  %v167_v2 = vld [vmem:[%s648_s1 + $0x10] sm:$0xff] (!%p134_p10)  ;;  %v504_v3 = vmov (!%p134_p10), 0.0|0.0   ;;  %vm505_vm0 = vmmov (!%p134_p10), 0   ;;  %v506_v6 = vmov (!%p134_p10), 0.0  }
   0xf   : > { %137 = sbr.rel (%p134_p10) target bundleno = 255 (0xff), region = 28  ;;  %360 = vmatprep.subr.bf16.mxu0 (!%p134_p10), %v504_v3  ;;  %v361_v4 = vpack.c.bf16 (!%p134_p10), %v166_v1, %v165_v0  ;;  %v168_v5 = vld [vmem:[%s648_s1 + $0x18] sm:$0xff] (!%p134_p10)  ;;  %357 = vmatprep.mubr.msk.f32.mxu0 (!%p134_p10), %vm505_vm0, %v506_v6  ;;  %p157_p11 = scmp.lt.s32.totalorder (!%p134_p10), %s494_s12, 1  ;;  %vm169_vm1 = vcmask (!%p134_p10), 261120   ;;  %vm244_vm2 = vcmask (!%p134_p10), 130048  }
  0x10   : > { %v364_v7 = vpack.c.bf16 (!%p134_p10), %v168_v5, %v167_v2  ;;  %s154_s8 = sand.u32 (!%p134_p10), 1, %s486_s10   ;;  %s341_s16 = sshll.u32 (!%p134_p10), %s494_s12, 7 }
  0x11   : > { %362 = vmatpush3.bf16.msra.mxu0 (!%p134_p10), %v361_v4  ;;  %s337_s15 = sshll.u32 (!%p134_p10), %s154_s8, 3  ;;  %s600_s25 = scalar_lea.hbm (!%p134_p10), %s649_s2, %s341_s16 }
  0x12   : > { %363 = vmatprep.subr.bf16.mxu0 (!%p134_p10), %v504_v3  ;;  %s156_s18 = scalar_lea.vmem (!%p134_p10), [#allocation2], %s337_s15  ;;  %s247_s26 = scalar_lea.sflag (!%p134_p10), [#allocation3], %s154_s8 }
  0x13   : > { %s261_s20 = sshll.u32 (!%p134_p10), %s156_s18, 4  ;;  %s602_s20 = int_to_ptr.vmem [resolvable:$true] %s261_s20 }
  0x14   : > { %s424_s27 = scalar_lea.vmem (!%p134_p10), %s602_s20, 128 }
  0x15   : > { %365 = vmatpush3.bf16.msra.mxu0 (!%p134_p10), %v364_v7  ;;  %p425_p12 = scmp.ne.s32.totalorder (!%p134_p10), %s602_s20, %s424_s27 }
  0x16   : > { %s158_s3 = scalar_select %p157_p11, %s494_s12, 1 }
  0x17   : > { %p426_p13 = pnand %p425_p12, %p563_p4  ;;  %s507_s12 = smov [#allocation2]  }
  0x18   : > { %s338_s4 = sshll.u32 %s158_s3, 3  ;;  %s428_s28 = sshll.u32 %s507_s12, 4  ;;  %s429_s28 = int_to_ptr.vmem [resolvable:$false] %s428_s28 }
  0x19   : > { %s163_s7 = scalar_lea.vmem %s647_s0, %s338_s4  ;;  %p427_p0 = pneg %p426_p13 }
  0x1a   : > { %v164_v8 = vld [vmem:[%s163_s7] sm:$0xff]  ;;  %s430_s29 = scalar_lea.vmem %s429_s28, 256  ;;  %p431_p1 = scmp.lt.s32.totalorder %s602_s20, %s429_s28 }
  0x1b   : > { %358 = vmatmul.mubr.msk.f32.vlgmr.msra.gmra.mrb[0].mxu0 %vm169_vm1, %v164_v8  ;;  %p432_p2 = scmp.lt.s32.totalorder %s430_s29, %s424_s27 }
  0x1d   : > { %p433_p3 = por %p432_p2, %p431_p1 }
  0x1f   : > { %p434_p5 = pnand %p433_p3, %p427_p0 }
  0xee   : > { %v239_v9 = vpop.f32.mrb[0].mxu0 }
  0xef   : > { %v243_v10 = vmul.f32 0.25, %v239_v9  ;;  %v359_v11 = vpop.f32.mrb[1].mxu0 }
  0xf1   : > { %245 = vst.msk [vmem:[%s156_s18] sm:$0xff] %vm244_vm2, %v243_v10 }
  0xf2   : > { %437 = shalt.err (!%p434_p5)
}
  0xf3   : > { %s438_s30 = scalar_lea.hbm %s600_s25, 128  ;;  %s442_s5 = scalar_lea.hbm %s649_s2, 256 }
  0xf4   : > { %p439_p6 = scmp.ne.s32.totalorder %s600_s25, %s438_s30  ;;  %p443_p10 = scmp.lt.u32.totalorder %s600_s25, %s649_s2 }
  0xf5   : > { %p444_p11 = scmp.lt.u32.totalorder %s442_s5, %s438_s30  ;;  %p446_p13 = scmp.lt.u32.totalorder %s438_s30, %s600_s25 }
  0xf6   : > { %p440_p7 = pnand %p439_p6, %p563_p4 }
  0xf7   : > { %p445_p12 = por %p444_p11, %p443_p10 }
  0xf8   : > { %p441_p9 = pneg %p440_p7 }
  0xf9   : > { %p447_p0 = por %p446_p13, %p445_p12 }
  0xfb   : > { %p448_p1 = pnand %p447_p0, %p441_p9 }
  0xfd   : > { %451 = shalt.err (!%p448_p1)
}
  0xfe   : > { %366 = dma.vmem_to_hbm [thread:$0]  (%p563_p4), %s602_s20, 128, %s600_s25, %s247_s26  }
  0xff PF: > { %p372_p2 = scmp.ge.s32.totalorder %s502_s14, 2  ;;  %s273_s8 = sand.u32 1, %s482_s9  }
 0x100   : > { %s274_s15 = scalar_lea.sflag [#allocation3], %s273_s8 }
 0x101   : > { %p369_p3 = pnand %p372_p2, %p570_p8 }
 0x103   : > { %477 = dma.done.wait (!%p369_p3), %s274_s15, 128  }
 0x104   : > { %479 = vsyncadd (!%p369_p3), %s274_s15, 4294967168  ;;  %s15_s14 = sadd.s32 1, %s502_s14   ;;  %s652_s9 = smov %s486_s10 }
 0x105   : > { %p12_p5 = scmp.ge.s32.totalorder %s15_s14, 4   ;;  %s653_s10 = smov %s490_s11 }
 0x106   : > { %s654_s11 = smov %s576_s22  ;;  %s655_s12 = smov %s498_s13 }
 0x107   : > { %s656_s13 = smov %s658_s17  ;;  %14 = sbr.rel (!%p12_p5) target bundleno = 4 (0x4), region = 63 }
 0x10e   :  { %279 = vsyncpa [#allocation3], 1 }
 0x10f   :  { %281 = vsyncpa [#allocation3 + $0x1], 1 }

</bundles_post_ra>
